<compile_context>
chip_gen: v6e
topology: v6e:2x2x1
jax: 0.10.0
libtpu: 0.0.40
codegen_flags: <defaults>
</compile_context>

<pallas_src>
import functools

import numpy as np
import jax
import jax.numpy as jnp
from jax.experimental import pallas as pl
from jax.experimental.pallas import tpu as pltpu

N_CATEGORIES = 18  # len(all_categories)
_LANE = 128
_SUBLANE = 8


def _round_up(n, m):
    return ((n + m - 1) // m) * m


def rnn_seq_kernel(h0_ref, x_ref, w_ref, b_ref, logp_ref, hid_ref):
    """One grid step == one RNN timestep.  Weights stay VMEM-resident across steps."""
    t = pl.program_id(0)

    # Initialize the resident hidden buffer from h0 on the first step.
    @pl.when(t == 0)
    def _():
        hid_ref[...] = h0_ref[...]

    # x = [hidden | category | char-input | zero-pad]; the streamed slab has zeros in
    # the hidden lanes, the resident hidden buffer has zeros everywhere else.
    x = x_ref[0] + hid_ref[...]                                     # (Bp, 128)

    # Single fused MXU pass:
    #   lanes [0:128)   -> logits slab (logits in [0:O), bias -1e30 masks pad lanes)
    #   lanes [128:256) -> hidden slab (hidden in [0:H), exact zeros elsewhere)
    slab = jnp.dot(x, w_ref[...],
                   preferred_element_type=jnp.float32,
                   precision=jax.lax.Precision.HIGHEST) + b_ref[...]  # (Bp, 256)

    hid_ref[...] = slab[:, _LANE:]           # new hidden, carried to the next step

    # dropout(p=0.1) -> identity (eval mode).

    # LogSoftmax over the logit lanes; padded lanes hold -1e30 (from the packed bias)
    # so exp underflows to exactly 0 and no runtime mask is needed.
    logits = slab[:, :_LANE]
    m = jnp.max(logits, axis=1, keepdims=True)
    z = logits - m
    lse = jnp.log(jnp.sum(jnp.exp(z), axis=1, keepdims=True))
    logp_ref[0] = (z - lse).astype(logp_ref.dtype)


def init_params(key, input_size, hidden_size, output_size):
    """Deterministic init mirroring nn.Linear default: U(-1/sqrt(fan_in), 1/sqrt(fan_in)).
    Weights are stored transposed as [in_features, out_features]."""
    def linear(k, fan_in, fan_out):
        kw, kb = jax.random.split(k)
        bound = 1.0 / jnp.sqrt(fan_in)
        w = jax.random.uniform(kw, (fan_in, fan_out), jnp.float32, -bound, bound)
        b = jax.random.uniform(kb, (1, fan_out), jnp.float32, -bound, bound)
        return w, b

    k1, k2, k3 = jax.random.split(key, 3)
    comb = N_CATEGORIES + input_size + hidden_size
    w_i2h, b_i2h = linear(k1, comb, hidden_size)
    w_i2o, b_i2o = linear(k2, comb, output_size)
    w_o2o, b_o2o = linear(k3, hidden_size + output_size, output_size)
    return dict(w_i2h=w_i2h, b_i2h=b_i2h,
                w_i2o=w_i2o, b_i2o=b_i2o,
                w_o2o=w_o2o, b_o2o=b_o2o)


def pack_params(params, input_size, hidden_size, output_size,
                weights_dtype=jnp.float32):
    """Fold o2o into the input-side weights, reorder the K axis to
    [hidden | category | input], bake the softmax lane mask into the bias, and pad
    everything to (128, 256)/(1, 256).  Done once, outside jit, in float64."""
    H, O, C = hidden_size, output_size, N_CATEGORIES
    comb = C + input_size + H
    assert comb <= _LANE, "combined input (cat+input+hidden) must fit 128 lanes"
    assert H <= _LANE and O <= _LANE

    w_i2h = np.asarray(params["w_i2h"], np.float64)
    b_i2h = np.asarray(params["b_i2h"], np.float64)
    w_i2o = np.asarray(params["w_i2o"], np.float64)
    b_i2o = np.asarray(params["b_i2o"], np.float64)
    w_o2o = np.asarray(params["w_o2o"], np.float64)
    b_o2o = np.asarray(params["b_o2o"], np.float64)

    # logits = x @ (W_i2h @ W_o2o[:H] + W_i2o @ W_o2o[H:]) + (b_i2h@W_o2o[:H] + b_i2o@W_o2o[H:] + b_o2o)
    w_lg = w_i2h @ w_o2o[:H] + w_i2o @ w_o2o[H:]          # (comb, O)
    b_lg = b_i2h @ w_o2o[:H] + b_i2o @ w_o2o[H:] + b_o2o  # (1, O)

    # Reorder input rows from [category | input | hidden] to [hidden | category | input]
    # so the new hidden (lanes [0:H) of the matmul output) adds straight back into x.
    perm = np.concatenate([np.arange(C + input_size, comb),
                           np.arange(0, C + input_size)])
    w_lg = w_lg[perm]
    w_h = w_i2h[perm]

    w_big = np.zeros((_LANE, 2 * _LANE), np.float64)
    b_big = np.zeros((1, 2 * _LANE), np.float64)
    # lanes [0:128): logits slab; padded logit lanes get -1e30 bias (softmax mask).
    w_big[:comb, :O] = w_lg
    b_big[0, :O] = b_lg[0]
    b_big[0, O:_LANE] = -1e30
    # lanes [128:256): hidden slab; padded lanes stay exactly zero.
    w_big[:comb, _LANE:_LANE + H] = w_h
    b_big[0, _LANE:_LANE + H] = b_i2h[0]

    return dict(w_big=jnp.asarray(w_big, weights_dtype),
                b_big=jnp.asarray(b_big, jnp.float32))


@functools.partial(jax.jit, static_argnames=("hidden_size", "output_size"))
def rnn_forward(category, inputs_seq, h0, packed, *, hidden_size, output_size):
    """Run the whole length-L sequence through one pallas_call.

    category:   (B, 18) one-hot, constant over the sequence (as in the tutorial)
    inputs_seq: (L, B, input_size) per-step inputs
    h0:         (B, hidden_size) initial hidden
    Returns (log_probs (L, B, O), final_hidden (B, H)).
    """
    L, B, I = inputs_seq.shape
    H, O, C = hidden_size, output_size, N_CATEGORIES
    bp = _round_up(max(B, _SUBLANE), _SUBLANE)

    # Assemble the streamed input slab ONCE per sequence (not per step):
    # lanes [0:H) left zero (hidden comes from the VMEM-resident buffer),
    # lanes [H:H+18) = category, lanes [H+18:H+18+I) = per-step input, rest zero.
    cat_seq = jnp.broadcast_to(category.astype(jnp.float32)[None], (L, B, C))
    x = jnp.concatenate([jnp.zeros((L, B, H), jnp.float32), cat_seq,
                         inputs_seq.astype(jnp.float32)], axis=2)
    x = jnp.pad(x, ((0, 0), (0, bp - B), (0, _LANE - (H + C + I))))
    h0p = jnp.pad(h0.astype(jnp.float32), ((0, bp - B), (0, _LANE - H)))

    logp_pad, hid_pad = pl.pallas_call(
        rnn_seq_kernel,
        grid=(L,),
        in_specs=[
            pl.BlockSpec((bp, _LANE), lambda t: (0, 0)),            # h0 (resident)
            pl.BlockSpec((1, bp, _LANE), lambda t: (t, 0, 0)),      # x_seq (streamed)
            pl.BlockSpec((_LANE, 2 * _LANE), lambda t: (0, 0)),     # W_big (resident)
            pl.BlockSpec((1, 2 * _LANE), lambda t: (0, 0)),         # b_big (resident)
        ],
        out_specs=(
            pl.BlockSpec((1, bp, _LANE), lambda t: (t, 0, 0)),      # per-step log-probs
            pl.BlockSpec((bp, _LANE), lambda t: (0, 0)),            # hidden (resident)
        ),
        out_shape=(
            jax.ShapeDtypeStruct((L, bp, _LANE), jnp.float32),
            jax.ShapeDtypeStruct((bp, _LANE), jnp.float32),
        ),
        compiler_params=pltpu.CompilerParams(
            dimension_semantics=("arbitrary",)),                    # recurrence over t
    )(h0p, x, packed["w_big"], packed["b_big"])

    # Slice back to logical shapes (once per sequence, not per step).
    return logp_pad[:, :B, :O], hid_pad[:B, :H]


def reference_step(category, inp, hidden, params):
    """Pure-JAX replica of the PyTorch module's forward (eval mode)."""
    hp = jax.lax.Precision.HIGHEST
    x = jnp.concatenate([category, inp, hidden], axis=1)
    h = jnp.dot(x, params["w_i2h"], precision=hp) + params["b_i2h"]
    o = jnp.dot(x, params["w_i2o"], precision=hp) + params["b_i2o"]
    oc = jnp.concatenate([h, o], axis=1)
    o = jnp.dot(oc, params["w_o2o"], precision=hp) + params["b_o2o"]
    return jax.nn.log_softmax(o, axis=1), h


if __name__ == "__main__":
    key = jax.random.PRNGKey(0)
    B, L = 2, 8
    input_size = 16
    hidden_size = 32
    output_size = 16

    k_cat, k_inp, k_par = jax.random.split(key, 3)
    # one-hot category rows (like the tutorial's categoryTensor), fixed per sequence
    cat_idx = jax.random.randint(k_cat, (B,), 0, N_CATEGORIES)
    category = jax.nn.one_hot(cat_idx, N_CATEGORIES, dtype=jnp.float32)
    inputs_seq = jax.random.normal(k_inp, (L, B, input_size), jnp.float32)
    h0 = jnp.zeros((B, hidden_size), jnp.float32)  # initHidden (batched)

    params = init_params(k_par, input_size, hidden_size, output_size)
    packed = pack_params(params, input_size, hidden_size, output_size)

    logp_seq, hid_final = rnn_forward(category, inputs_seq, h0, packed,
                                      hidden_size=hidden_size,
                                      output_size=output_size)
    jax.block_until_ready((logp_seq, hid_final))

    # Reference: loop the per-step module forward.
    hid = h0
    ref_logps = []
    for t in range(L):
        lp, hid = reference_step(category, inputs_seq[t], hid, params)
        ref_logps.append(lp)
    ref_logp = jnp.stack(ref_logps, axis=0)

    assert logp_seq.shape == (L, B, output_size)
    assert hid_final.shape == (B, hidden_size)
    # Tolerance absorbs the (tiny) reassociation from the pack-time o2o fold.
    assert jnp.allclose(logp_seq, ref_logp, atol=1e-4, rtol=1e-4)
    assert jnp.allclose(hid_final, hid, atol=1e-4, rtol=1e-4)

    print("KERNEL_OK")
</pallas_src>

<mosaic_0001>
module attributes {stable_mosaic.version = 11 : i64} {
  func.func @rnn_seq_kernel(%arg0: i32, %arg1: memref<8x128xf32, #tpu.memory_space<vmem>>, %arg2: memref<1x8x128xf32, #tpu.memory_space<vmem>>, %arg3: memref<128x256xf32, #tpu.memory_space<vmem>>, %arg4: memref<1x256xf32, #tpu.memory_space<vmem>>, %arg5: memref<1x8x128xf32, #tpu.memory_space<vmem>>, %arg6: memref<8x128xf32, #tpu.memory_space<vmem>>) attributes {dimension_semantics = [#tpu.dimension_semantics<arbitrary>], iteration_bounds = array<i64: 8>, scalar_prefetch = 0 : i64, scratch_operands = 0 : i64, tpu.core_type = #tpu.core_type<tc>, window_params = [{pipeline_mode = #tpu.pipeline_mode<synchronous>, transform_indices = @transform_0, window_bounds = array<i64: 8, 128>}, {transform_indices = @transform_1, window_bounds = array<i64: 1, 8, 128>}, {pipeline_mode = #tpu.pipeline_mode<synchronous>, transform_indices = @transform_2, window_bounds = array<i64: 128, 256>}, {pipeline_mode = #tpu.pipeline_mode<synchronous>, transform_indices = @transform_3, window_bounds = array<i64: 1, 256>}, {transform_indices = @transform_4, window_bounds = array<i64: 1, 8, 128>}, {pipeline_mode = #tpu.pipeline_mode<synchronous>, transform_indices = @transform_5, window_bounds = array<i64: 8, 128>}]} {
    %c0_i32 = arith.constant 0 : i32
    %0 = arith.cmpi eq, %arg0, %c0_i32 : i32
    %1 = arith.extui %0 : i1 to i32
    %c0_i32_0 = arith.constant 0 : i32
    %2 = arith.cmpi ne, %1, %c0_i32_0 : i32
    scf.if %2 {
      %c0_16 = arith.constant 0 : index
      %c0_17 = arith.constant 0 : index
      %28 = vector.load %arg1[%c0_16, %c0_17] : memref<8x128xf32, #tpu.memory_space<vmem>>, vector<8x128xf32>
      %c0_18 = arith.constant 0 : index
      %c0_19 = arith.constant 0 : index
      %29 = vector.load %arg6[%c0_18, %c0_19] : memref<8x128xf32, #tpu.memory_space<vmem>>, vector<8x128xf32>
      tpu.vector_store %arg6[%c0_18, %c0_19], %28 {strides = array<i32>} : memref<8x128xf32, #tpu.memory_space<vmem>>, vector<8x128xf32>,
    } else {
    }
    %c0 = arith.constant 0 : index
    %c0_1 = arith.constant 0 : index
    %c0_2 = arith.constant 0 : index
    %3 = vector.load %arg2[%c0, %c0_1, %c0_2] : memref<1x8x128xf32, #tpu.memory_space<vmem>>, vector<1x8x128xf32>
    %4 = vector.shape_cast %3 : vector<1x8x128xf32> to vector<8x128xf32>
    %c0_3 = arith.constant 0 : index
    %c0_4 = arith.constant 0 : index
    %5 = vector.load %arg6[%c0_3, %c0_4] : memref<8x128xf32, #tpu.memory_space<vmem>>, vector<8x128xf32>
    %6 = arith.addf %4, %5 : vector<8x128xf32>
    %c0_5 = arith.constant 0 : index
    %c0_6 = arith.constant 0 : index
    %7 = vector.load %arg3[%c0_5, %c0_6] : memref<128x256xf32, #tpu.memory_space<vmem>>, vector<128x256xf32>
    %cst = arith.constant dense<0.000000e+00> : vector<8x256xf32>
    %8 = tpu.matmul %6, %7, %cst {dimension_numbers = #tpu.dot_dimension_numbers<[1], [0], [0], [1], [0, 0, 1, 1], [], []>, precision = #tpu.contract_precision<fp32>} : vector<8x128xf32>, vector<128x256xf32>, vector<8x256xf32> -> vector<8x256xf32>
    %c0_7 = arith.constant 0 : index
    %c0_8 = arith.constant 0 : index
    %9 = vector.load %arg4[%c0_7, %c0_8] : memref<1x256xf32, #tpu.memory_space<vmem>>, vector<1x256xf32>
    %10 = vector.broadcast %9 : vector<1x256xf32> to vector<8x256xf32>
    %11 = arith.addf %8, %10 : vector<8x256xf32>
    %12 = vector.extract_strided_slice %11 {offsets = [0, 128], sizes = [8, 128], strides = [1, 1]} : vector<8x256xf32> to vector<8x128xf32>
    %c0_9 = arith.constant 0 : index
    %c0_10 = arith.constant 0 : index
    %13 = vector.load %arg6[%c0_9, %c0_10] : memref<8x128xf32, #tpu.memory_space<vmem>>, vector<8x128xf32>
    tpu.vector_store %arg6[%c0_9, %c0_10], %12 {strides = array<i32>} : memref<8x128xf32, #tpu.memory_space<vmem>>, vector<8x128xf32>,
    %14 = vector.extract_strided_slice %11 {offsets = [0, 0], sizes = [8, 128], strides = [1, 1]} : vector<8x256xf32> to vector<8x128xf32>
    %cst_11 = arith.constant dense<0xFF800000> : vector<8xf32>
    %15 = vector.multi_reduction <maximumf>, %14, %cst_11 [1] : vector<8x128xf32> to vector<8xf32>
    %16 = vector.shape_cast %15 : vector<8xf32> to vector<8x1xf32>
    %17 = vector.broadcast %16 : vector<8x1xf32> to vector<8x128xf32>
    %18 = arith.subf %14, %17 : vector<8x128xf32>
    %19 = math.exp %18 : vector<8x128xf32>
    %cst_12 = arith.constant dense<0.000000e+00> : vector<8xf32>
    %20 = vector.multi_reduction <add>, %19, %cst_12 [1] : vector<8x128xf32> to vector<8xf32>
    %21 = vector.shape_cast %20 : vector<8xf32> to vector<8x1xf32>
    %22 = math.log %21 : vector<8x1xf32>
    %23 = vector.broadcast %22 : vector<8x1xf32> to vector<8x128xf32>
    %24 = arith.subf %18, %23 : vector<8x128xf32>
    %c0_13 = arith.constant 0 : index
    %c0_14 = arith.constant 0 : index
    %c0_15 = arith.constant 0 : index
    %25 = vector.load %arg5[%c0_13, %c0_14, %c0_15] : memref<1x8x128xf32, #tpu.memory_space<vmem>>, vector<1x8x128xf32>
    %26 = vector.shape_cast %25 : vector<1x8x128xf32> to vector<8x128xf32>
    %27 = vector.shape_cast %24 : vector<8x128xf32> to vector<1x8x128xf32>
    tpu.vector_store %arg5[%c0_13, %c0_14, %c0_15], %27 {strides = array<i32>} : memref<1x8x128xf32, #tpu.memory_space<vmem>>, vector<1x8x128xf32>,
    return
  }
  func.func @transform_0(%arg0: i32) -> (i32, i32) {
    %c0_i32 = arith.constant 0 : i32
    %c0_i32_0 = arith.constant 0 : i32
    %c0_i32_1 = arith.constant 0 : i32
    return %c0_i32, %c0_i32_0 : i32, i32
  }
  func.func @transform_1(%arg0: i32) -> (i32, i32, i32) {
    %c0_i32 = arith.constant 0 : i32
    %c0_i32_0 = arith.constant 0 : i32
    %c0_i32_1 = arith.constant 0 : i32
    return %arg0, %c0_i32, %c0_i32_0 : i32, i32, i32
  }
  func.func @transform_2(%arg0: i32) -> (i32, i32) {
    %c0_i32 = arith.constant 0 : i32
    %c0_i32_0 = arith.constant 0 : i32
    %c0_i32_1 = arith.constant 0 : i32
    return %c0_i32, %c0_i32_0 : i32, i32
  }
  func.func @transform_3(%arg0: i32) -> (i32, i32) {
    %c0_i32 = arith.constant 0 : i32
    %c0_i32_0 = arith.constant 0 : i32
    %c0_i32_1 = arith.constant 0 : i32
    return %c0_i32, %c0_i32_0 : i32, i32
  }
  func.func @transform_4(%arg0: i32) -> (i32, i32, i32) {
    %c0_i32 = arith.constant 0 : i32
    %c0_i32_0 = arith.constant 0 : i32
    %c0_i32_1 = arith.constant 0 : i32
    return %arg0, %c0_i32, %c0_i32_0 : i32, i32, i32
  }
  func.func @transform_5(%arg0: i32) -> (i32, i32) {
    %c0_i32 = arith.constant 0 : i32
    %c0_i32_0 = arith.constant 0 : i32
    %c0_i32_1 = arith.constant 0 : i32
    return %c0_i32, %c0_i32_0 : i32, i32
  }
}

</mosaic_0001>

<bundles_post_ra>
// kernel: rnn_forward.1
= control target key start
LH: loop header
LB: loop body
LE: loop exit
PB: predicated region body
PF: predicated region fallthrough
CT: control target
= control target key end

     0   :  { %11 = vsyncpa [#allocation3], 0  ;;  %s1334_s18 = smov 0   ;;  %s1990_s0 = inlined_call_operand.vmem [shape: f32[8,128], index: 0, kind: input, shape index: {}]   ;;  %s1991_s1 = inlined_call_operand.vmem [shape: f32[8,8,128], index: 1, kind: input, shape index: {}]   ;;  %s1992_s2 = inlined_call_operand.hbm [shape: f32[128,256], index: 2, kind: input, shape index: {}]   ;;  %s1993_s3 = inlined_call_operand.vmem [shape: f32[1,256], index: 3, kind: input, shape index: {}]   ;;  %s1994_s4 = inlined_call_operand.vmem [shape: f32[8,8,128], index: 4, kind: output, shape index: {0}]   ;;  %s1995_s5 = inlined_call_operand.vmem [shape: f32[8,128], index: 5, kind: output, shape index: {1}]  }
   0x1 LB: > { %s1340_s19 = sadd.s32 4294967295, %s1298_s18   ;;  %p1226_p0 = scmp.ge.s32.totalorder %s1298_s18, 1  ;;  %s1298_s18 = sphi %s1334_s18, %s17_s18  }
   0x2   : > { %p158_p1 = scmp.lt.s32.totalorder %s1298_s18, 9  ;;  %s1300_s20 = smov [#allocation2]  }
   0x3   : > { %s173_s21 = sshll.u32 %s1300_s20, 4  ;;  %p1244_p4 = scmp.eq.s32.totalorder %s1340_s19, 0  ;;  %s174_s21 = int_to_ptr.vmem [resolvable:$true] %s173_s21 }
   0x4   : > { %p1345_p3 = pnand %p1226_p0, %p158_p1  ;;  %s1273_s23 = scalar_lea.vmem %s174_s21, 4096 }
   0x5   : > { %p1274_p8 = scmp.ne.s32.totalorder %s174_s21, %s1273_s23  ;;  %p1281_p11 = scmp.lt.s32.totalorder %s174_s21, %s174_s21 }
   0x6   : > { %p1240_p5 = pneg %p1345_p3  ;;  %p1282_p12 = scmp.lt.s32.totalorder %s1273_s23, %s1273_s23 }
   0x8   : > { %p1241_p6 = pnand %p1244_p4, %p1240_p5  ;;  %p1283_p13 = por %p1282_p12, %p1281_p11 }
   0xa   : > { %p1264_p7 = pneg %p1241_p6 }
   0xc   : > { %p1276_p9 = pnand %p1274_p8, %p1264_p7 }
   0xe   : > { %p1277_p10 = pneg %p1276_p9 }
  0x10   : > { %p1284_p2 = pnand %p1283_p13, %p1277_p10 }
  0x12   : > { %1287 = shalt.err (!%p1284_p2)
}
  0x13   : > { %s1301_s24 = smov 256   ;;  %s1302_s25 = smov 16  }
  0x14   : > { %1243 = dma.hbm_to_vmem [thread:$0]  (!%p1241_p6), %s1992_s2, 4096, %s174_s21, [#allocation3], %s1301_s24, %s1301_s24, %s1302_s25  }
  0x15   : > { %199 = sbr.rel (%p1345_p3) target bundleno = 663 (0x297), region = 36 }
  0x1a   : > { %1293 = dma.done.wait (%p1244_p4), [#allocation3], 4096  }
  0x1b   : > { %1295 = vsyncadd (%p1244_p4), [#allocation3], 4294963200  ;;  %p225_p0 = scmp.lt.s32.totalorder %s1340_s19, 7  ;;  %p2063_p1 = scmp.ne.s32.totalorder %s1340_s19, 0 }
  0x1d   : > { %s226_s28 = scalar_select %p225_p0, %s1340_s19, 7 }
  0x1e   : > { %236 = sbr.rel (%p2063_p1) target bundleno = 37 (0x25), region = 44 }
  0x1f   : > { %s1231_s29 = sshll.u32 %s226_s28, 3 }
  0x20   : > { %s1368_s7 = scalar_lea.vmem %s1991_s1, %s1231_s29  ;;  %s1373_s10 = scalar_lea.vmem %s1994_s4, %s1231_s29 }
  0x23   : > { %v237_v0 = vld [vmem:[%s1990_s0] sm:$0xff] }
  0x24   : > { %238 = vst [vmem:[%s1995_s5] sm:$0xff] %v237_v0 }
  0x25 PF: > { %v273_v1 = vld [vmem:[#allocation2 + $0xf8] sm:$0xff]  ;;  %v272_v2 = vld [vmem:[#allocation2 + $0xf0] sm:$0xff]  ;;  %v271_v3 = vld [vmem:[#allocation2 + $0xe8] sm:$0xff]  ;;  %v2010_v10 = vmov 0.0  }
  0x26   : > { %v1383_v4 = vand.u32 4294901760, %v273_v1  ;;  %v1385_v5 = vand.u32 4294901760, %v272_v2  ;;  %v1387_v6 = vand.u32 4294901760, %v271_v3  ;;  %v270_v7 = vld [vmem:[#allocation2 + $0xe0] sm:$0xff]  ;;  %v269_v8 = vld [vmem:[#allocation2 + $0xd8] sm:$0xff]  ;;  %v268_v9 = vld [vmem:[#allocation2 + $0xd0] sm:$0xff]  ;;  %382 = vmatprep.mubr.f32.mxu0 %v2010_v10  ;;  %618 = vmatprep.mubr.f32.mxu1 %v2010_v10 }
  0x27   : > { %v1391_v11 = vand.u32 4294901760, %v270_v7  ;;  %v1393_v12 = vand.u32 4294901760, %v269_v8  ;;  %v1395_v13 = vand.u32 4294901760, %v268_v9  ;;  %v267_v14 = vld [vmem:[#allocation2 + $0xc8] sm:$0xff]  ;;  %v266_v15 = vld [vmem:[#allocation2 + $0xc0] sm:$0xff]  ;;  %v265_v16 = vld [vmem:[#allocation2 + $0xb8] sm:$0xff] }
  0x28   : > { %287 = vmatprep.subr.mxu0 %v1383_v4  ;;  %v1398_v17 = vand.u32 4294901760, %v267_v14  ;;  %v1400_v18 = vand.u32 4294901760, %v266_v15  ;;  %v1402_v19 = vand.u32 4294901760, %v265_v16  ;;  %v1405_v20 = vsub.f32 %v273_v1, %v1383_v4  ;;  %v1407_v21 = vld [vmem:[#allocation2 + $0xb0] sm:$0xff]  ;;  %v1409_v22 = vld [vmem:[#allocation2 + $0xa8] sm:$0xff]  ;;  %v1411_v23 = vld [vmem:[#allocation2 + $0xa0] sm:$0xff] }
  0x29   : > { %289 = vmatpush1.msra.mxu0 %v1385_v5  ;;  %v1415_v24 = vand.u32 4294901760, %v1407_v21  ;;  %v1418_v25 = vsub.f32 %v272_v2, %v1385_v5  ;;  %v1421_v26 = vand.u32 4294901760, %v1409_v22  ;;  %v1424_v27 = vsub.f32 %v271_v3, %v1387_v6  ;;  %v1426_v28 = vld [vmem:[#allocation2 + $0x98] sm:$0xff]  ;;  %v1428_v29 = vld [vmem:[#allocation2 + $0x90] sm:$0xff]  ;;  %v1430_v30 = vld [vmem:[#allocation2 + $0x88] sm:$0xff] }
  0x2a   : > { %291 = vmatprep.subr.mxu0 %v1387_v6  ;;  %v2008_v31 = vand.u32 4294901760, %v1405_v20  ;;  %v1435_v32 = vand.u32 4294901760, %v1411_v23  ;;  %v1438_v33 = vsub.f32 %v270_v7, %v1391_v11  ;;  %v1441_v34 = vand.u32 4294901760, %v1426_v28  ;;  %v1452_v39 = vld [vmem:[#allocation2 + $0x80] sm:$0xff]  ;;  %v1476_v48 = vld [vmem:[#allocation2 + $0x78] sm:$0xff]  ;;  %v1486_v53 = vld [vmem:[#allocation2 + $0x70] sm:$0xff] }
  0x2b   : > { %293 = vmatpush1.msra.mxu0 %v1391_v11  ;;  %v2007_v35 = vand.u32 4294901760, %v1418_v25  ;;  %v2005_v36 = vand.u32 4294901760, %v1424_v27  ;;  %v1447_v37 = vsub.f32 %v269_v8, %v1393_v12  ;;  %v1450_v38 = vand.u32 4294901760, %v1428_v29  ;;  %v1493_v58 = vld [vmem:[#allocation2 + $0x68] sm:$0xff]  ;;  %v1505_v63 = vld [vmem:[#allocation2 + $0x60] sm:$0xff]  ;;  %v1517_v7 = vld [vmem:[#allocation2 + $0x58] sm:$0xff] }
  0x2c   : > { %2064 = vst [vmem:[#allocation5_spill] sm:$0xff] %v1441_v34  ;;  %295 = vmatprep.subr.mxu0 %v1393_v12  ;;  %v397_v40 = vsub.f32 %v1405_v20, %v2008_v31  ;;  %v2003_v41 = vand.u32 4294901760, %v1438_v33  ;;  %v1460_v42 = vsub.f32 %v268_v9, %v1395_v13  ;;  %v1463_v43 = vand.u32 4294901760, %v1430_v30 }
  0x2d   : > { %2065 = vst [vmem:[#allocation6_spill] sm:$0xff] %v1450_v38  ;;  %297 = vmatpush1.msra.mxu0 %v1395_v13  ;;  %v403_v44 = vsub.f32 %v1418_v25, %v2007_v35  ;;  %v409_v45 = vsub.f32 %v1424_v27, %v2005_v36  ;;  %v2002_v46 = vand.u32 4294901760, %v1447_v37  ;;  %v1474_v47 = vsub.f32 %v267_v14, %v1398_v17  ;;  %v1608_v36 = vld [vmem:[#allocation2 + $0x28] sm:$0xff]  ;;  %v1618_v35 = vld [vmem:[#allocation2 + $0x20] sm:$0xff] }
  0x2e   : > { %2066 = vst [vmem:[#allocation7_spill] sm:$0xff] %v1463_v43  ;;  %299 = vmatprep.subr.mxu0 %v1398_v17  ;;  %v398_v49 = vand.u32 4294901760, %v397_v40  ;;  %v415_v50 = vsub.f32 %v1438_v33, %v2003_v41  ;;  %v2000_v51 = vand.u32 4294901760, %v1460_v42  ;;  %v1484_v52 = vand.u32 4294901760, %v1452_v39 }
  0x2f   : > { %301 = vmatpush1.msra.mxu0 %v1400_v18  ;;  %v404_v54 = vand.u32 4294901760, %v403_v44  ;;  %v410_v55 = vand.u32 4294901760, %v409_v45  ;;  %v421_v56 = vsub.f32 %v1447_v37, %v2002_v46  ;;  %v1998_v57 = vand.u32 4294901760, %v1474_v47  ;;  %v1595_v46 = vld [vmem:[#allocation2 + $0x30] sm:$0xff] }
  0x30   : > { %2067 = vst [vmem:[#allocation8_spill] sm:$0xff] %v1484_v52  ;;  %303 = vmatprep.subr.mxu0 %v1402_v19  ;;  %399 = vmatprep.subr.mxu1 %v398_v49  ;;  %v416_v59 = vand.u32 4294901760, %v415_v50  ;;  %v427_v60 = vsub.f32 %v1460_v42, %v2000_v51  ;;  %v1500_v61 = vsub.f32 %v266_v15, %v1400_v18  ;;  %v1503_v62 = vand.u32 4294901760, %v1476_v48 }
  0x31   : > { %305 = vmatpush1.msra.mxu0 %v1415_v24  ;;  %405 = vmatpush1.msra.mxu1 %v404_v54  ;;  %v422_v0 = vand.u32 4294901760, %v421_v56  ;;  %v433_v1 = vsub.f32 %v1474_v47, %v1998_v57  ;;  %v1512_v2 = vsub.f32 %v265_v16, %v1402_v19  ;;  %v1515_v3 = vand.u32 4294901760, %v1486_v53  ;;  %v1528_v16 = vld [vmem:[#allocation2 + $0x50] sm:$0xff] }
  0x32   : > { %2068 = vst [vmem:[#allocation9_spill] sm:$0xff] %v1503_v62  ;;  %307 = vmatprep.subr.mxu0 %v1421_v26  ;;  %411 = vmatprep.subr.mxu1 %v410_v55  ;;  %v428_v8 = vand.u32 4294901760, %v427_v60  ;;  %v1997_v9 = vand.u32 4294901760, %v1500_v61  ;;  %v1523_v14 = vsub.f32 %v1407_v21, %v1415_v24  ;;  %v1526_v15 = vand.u32 4294901760, %v1493_v58 }
  0x33   : > { %2069 = vst [vmem:[#allocation10_spill] sm:$0xff] %v1515_v3  ;;  %309 = vmatpush1.msra.mxu0 %v1435_v32  ;;  %417 = vmatpush1.msra.mxu1 %v416_v59  ;;  %v434_v40 = vand.u32 4294901760, %v433_v1  ;;  %v1996_v44 = vand.u32 4294901760, %v1512_v2  ;;  %v1534_v45 = vsub.f32 %v1409_v22, %v1421_v26  ;;  %v1537_v49 = vand.u32 4294901760, %v1505_v63  ;;  %v1551_v22 = vld [vmem:[#allocation2 + $0x48] sm:$0xff] }
  0x34   : > { %2070 = vst [vmem:[#allocation11_spill] sm:$0xff] %v1526_v15  ;;  %311 = vmatprep.subr.mxu0 %v1441_v34  ;;  %423 = vmatprep.subr.mxu1 %v422_v0  ;;  %v439_v21 = vsub.f32 %v1500_v61, %v1997_v9  ;;  %v1999_v50 = vand.u32 4294901760, %v1523_v14  ;;  %v1546_v54 = vsub.f32 %v1411_v23, %v1435_v32  ;;  %v1549_v55 = vand.u32 4294901760, %v1517_v7  ;;  %v1574_v9 = vld [vmem:[#allocation2 + $0x40] sm:$0xff] }
  0x35   : > { %2071 = vst [vmem:[#allocation12_spill] sm:$0xff] %v1537_v49  ;;  %313 = vmatpush1.msra.mxu0 %v1450_v38  ;;  %429 = vmatpush1.msra.mxu1 %v428_v8  ;;  %v445_v56 = vsub.f32 %v1512_v2, %v1996_v44  ;;  %v2001_v59 = vand.u32 4294901760, %v1534_v45  ;;  %v1560_v60 = vsub.f32 %v1426_v28, %v1441_v34  ;;  %v1563_v23 = vand.u32 4294901760, %v1528_v16  ;;  %v239_v34 = vld [vmem:[%s1368_s7] sm:$0xff] }
  0x36   : > { %2072 = vst [vmem:[#allocation13_spill] sm:$0xff] %v1549_v55  ;;  %315 = vmatprep.subr.mxu0 %v1463_v43  ;;  %435 = vmatprep.subr.mxu1 %v434_v40  ;;  %v440_v0 = vand.u32 4294901760, %v439_v21  ;;  %v451_v1 = vsub.f32 %v1523_v14, %v1999_v50  ;;  %v2004_v8 = vand.u32 4294901760, %v1546_v54  ;;  %v1572_v44 = vsub.f32 %v1428_v29, %v1450_v38  ;;  %v1584_v50 = vld [vmem:[#allocation2 + $0x38] sm:$0xff] }
  0x37   : > { %2073 = vst [vmem:[#allocation14_spill] sm:$0xff] %v1563_v23  ;;  %317 = vmatpush1.msra.mxu0 %v1484_v52  ;;  %v446_v28 = vand.u32 4294901760, %v445_v56  ;;  %v457_v40 = vsub.f32 %v1534_v45, %v2001_v59  ;;  %v2006_v21 = vand.u32 4294901760, %v1560_v60  ;;  %v1582_v57 = vand.u32 4294901760, %v1551_v22 }
  0x38   : > { %441 = vmatpush1.msra.mxu1 %v440_v0  ;;  %319 = vmatprep.subr.mxu0 %v1503_v62  ;;  %v452_v29 = vand.u32 4294901760, %v451_v1  ;;  %v463_v51 = vsub.f32 %v1546_v54, %v2004_v8  ;;  %v2009_v56 = vand.u32 4294901760, %v1572_v44  ;;  %v1593_v59 = vsub.f32 %v1430_v30, %v1463_v43 }
  0x39   : > { %2074 = vst [vmem:[#allocation15_spill] sm:$0xff] %v1582_v57  ;;  %447 = vmatprep.subr.mxu1 %v446_v28  ;;  %321 = vmatpush1.msra.mxu0 %v1515_v3  ;;  %v458_v41 = vand.u32 4294901760, %v457_v40  ;;  %v469_v0 = vsub.f32 %v1560_v60, %v2006_v21  ;;  %v1602_v1 = vand.u32 4294901760, %v1574_v9  ;;  %v1606_v8 = vsub.f32 %v1452_v39, %v1484_v52 }
  0x3a   : > { %453 = vmatpush1.msra.mxu1 %v452_v29  ;;  %323 = vmatprep.subr.mxu0 %v1526_v15  ;;  %v464_v30 = vand.u32 4294901760, %v463_v51  ;;  %v475_v28 = vsub.f32 %v1572_v44, %v2009_v56  ;;  %v2014_v40 = vand.u32 4294901760, %v1593_v59  ;;  %v1616_v21 = vand.u32 4294901760, %v1584_v50  ;;  %v1629_v56 = vld [vmem:[#allocation2 + $0x18] sm:$0xff] }
  0x3b   : > { %2075 = vst [vmem:[#allocation16_spill] sm:$0xff] %v1602_v1  ;;  %459 = vmatprep.subr.mxu1 %v458_v41  ;;  %325 = vmatpush1.msra.mxu0 %v1537_v49  ;;  %v470_v39 = vand.u32 4294901760, %v469_v0  ;;  %v2017_v29 = vand.u32 4294901760, %v1606_v8  ;;  %v1624_v51 = vsub.f32 %v1476_v48, %v1503_v62  ;;  %v1627_v31 = vand.u32 4294901760, %v1595_v46 }
  0x3c   : > { %2076 = vst [vmem:[#allocation17_spill] sm:$0xff] %v1616_v21  ;;  %465 = vmatpush1.msra.mxu1 %v464_v30  ;;  %327 = vmatprep.subr.mxu0 %v1549_v55  ;;  %v476_v10 = vand.u32 4294901760, %v475_v28  ;;  %v481_v41 = vsub.f32 %v1593_v59, %v2014_v40  ;;  %v1637_v0 = vsub.f32 %v1486_v53, %v1515_v3  ;;  %v1640_v48 = vand.u32 4294901760, %v1608_v36  ;;  %v1654_v53 = vld [vmem:[#allocation2 + $0x10] sm:$0xff] }
  0x3d   : > { %2077 = vst [vmem:[#allocation18_spill] sm:$0xff] %v1627_v31  ;;  %471 = vmatprep.subr.mxu1 %v470_v39  ;;  %329 = vmatpush1.msra.mxu0 %v1563_v23  ;;  %v487_v30 = vsub.f32 %v1606_v8, %v2017_v29  ;;  %v1649_v62 = vsub.f32 %v1493_v58, %v1526_v15  ;;  %v1652_v40 = vand.u32 4294901760, %v1618_v35  ;;  %v1663_v28 = vand.u32 4294901760, %v1629_v56  ;;  %v1665_v58 = vld [vmem:[#allocation2 + $0x8] sm:$0xff] }
  0x3e   : > { %477 = vmatpush1.msra.mxu1 %v476_v10  ;;  %331 = vmatprep.subr.mxu0 %v1582_v57  ;;  %v482_v39 = vand.u32 4294901760, %v481_v41  ;;  %v1660_v29 = vsub.f32 %v1505_v63, %v1537_v49  ;;  %v2080_v52 = vand.u32 4294901760, %v1624_v51  ;;  %v1674_v3 = vsub.f32 %v1517_v7, %v1549_v55  ;;  %v1688_v41 = vld [vmem:[#allocation2] sm:$0xff] }
  0x3f   : > { %2078 = vst [vmem:[#allocation19_spill] sm:$0xff] %v1649_v62  ;;  %2079 = vst [vmem:[#allocation20_spill] sm:$0xff] %v1652_v40  ;;  %333 = vmatpush1.msra.mxu0 %v1602_v1  ;;  %v488_v15 = vand.u32 4294901760, %v487_v30  ;;  %v2082_v63 = vand.u32 4294901760, %v1637_v0  ;;  %v1682_v43 = vand.u32 4294901760, %v1654_v53  ;;  %v1696_v30 = vand.u32 4294901760, %v1665_v58 }
  0x40   : > { %v493_v10 = vsub.f32 %v1624_v51, %v2080_v52  ;;  %2081 = vst [vmem:[#allocation21_spill] sm:$0xff] %v1674_v3  ;;  %483 = vmatprep.subr.mxu1 %v482_v39  ;;  %335 = vmatprep.subr.mxu0 %v1616_v21  ;;  %v1686_v52 = vsub.f32 %v1528_v16, %v1563_v23  ;;  %v2083_v39 = vand.u32 4294901760, %v1649_v62  ;;  %v2085_v16 = vand.u32 4294901760, %v1660_v29 }
  0x41   : > { %v499_v49 = vsub.f32 %v1637_v0, %v2082_v63  ;;  %489 = vmatpush1.msra.mxu1 %v488_v15  ;;  %337 = vmatpush1.msra.mxu0 %v1627_v31  ;;  %2084 = vst [vmem:[#allocation22_spill] sm:$0xff] %v1696_v30 }
  0x42   : > { %v494_v7 = vand.u32 4294901760, %v493_v10  ;;  %v505_v63 = vsub.f32 %v1649_v62, %v2083_v39  ;;  %339 = vmatprep.subr.mxu0 %v1640_v48  ;;  %v511_v23 = vsub.f32 %v1660_v29, %v2085_v16  ;;  %v1705_v10 = vsub.f32 %v1551_v22, %v1582_v57  ;;  %v240_v39 = vld [vmem:[%s1995_s5] sm:$0xff] }
  0x43   : > { %v500_v38 = vand.u32 4294901760, %v499_v49  ;;  %341 = vmatpush1.msra.mxu0 %v1652_v40  ;;  %v2086_v49 = vand.u32 4294901760, %v1674_v3  ;;  %v1716_v16 = vand.u32 4294901760, %v1688_v41  ;;  %v1720_v22 = vsub.f32 %v1574_v9, %v1602_v1 }
  0x44   : > { %495 = vmatprep.subr.mxu1 %v494_v7  ;;  %v506_v55 = vand.u32 4294901760, %v505_v63  ;;  %v512_v15 = vand.u32 4294901760, %v511_v23  ;;  %343 = vmatprep.subr.mxu0 %v1663_v28  ;;  %v2087_v7 = vand.u32 4294901760, %v1686_v52  ;;  %v2043_v57 = vand.u32 4294901760, %v1705_v10 }
  0x45   : > { %v517_v62 = vsub.f32 %v1674_v3, %v2086_v49  ;;  %501 = vmatpush1.msra.mxu1 %v500_v38  ;;  %v1729_v49 = vsub.f32 %v1584_v50, %v1616_v21  ;;  %345 = vmatpush1.msra.mxu0 %v1682_v43  ;;  %v2042_v9 = vand.u32 4294901760, %v1720_v22  ;;  %v241_v38 = vadd.f32 %v240_v39, %v239_v34 }
  0x46   : > { %v523_v63 = vsub.f32 %v1686_v52, %v2087_v7  ;;  %507 = vmatprep.subr.mxu1 %v506_v55  ;;  %v1735_v23 = vsub.f32 %v1595_v46, %v1627_v31  ;;  %347 = vmatprep.subr.mxu0 %v1696_v30  ;;  %v529_v50 = vsub.f32 %v1705_v10, %v2043_v57 }
  0x47   : > { %v518_v3 = vand.u32 4294901760, %v517_v62  ;;  %513 = vmatpush1.msra.mxu1 %v512_v15  ;;  %v2044_v55 = vand.u32 4294901760, %v1729_v49  ;;  %v1744_v62 = vsub.f32 %v1608_v36, %v1640_v48  ;;  %349 = vmatpush1.msra.mxu0 %v1716_v16  ;;  %v535_v34 = vsub.f32 %v1720_v22, %v2042_v9 }
  0x48   : > { %v524_v1 = vand.u32 4294901760, %v523_v63  ;;  %v1750_v46 = vand.u32 4294901760, %v241_v38  ;;  %v2047_v15 = vand.u32 4294901760, %v1735_v23  ;;  %v1755_v39 = vsub.f32 %v1618_v35, %v1652_v40  ;;  %628 = vmatprep.subr.mxu0 %v1405_v20 }
  0x49   : > { %519 = vmatprep.subr.mxu1 %v518_v3  ;;  %v530_v7 = vand.u32 4294901760, %v529_v50  ;;  %v541_v36 = vsub.f32 %v1729_v49, %v2044_v55  ;;  %v2048_v3 = vand.u32 4294901760, %v1744_v62  ;;  %v1764_v63 = vsub.f32 %v1629_v56, %v1663_v28 }
  0x4a   : > { %2088 = vst [vmem:[#allocation23_spill] sm:$0xff] %v1750_v46  ;;  %525 = vmatpush1.msra.mxu1 %v524_v1  ;;  %v536_v9 = vand.u32 4294901760, %v535_v34  ;;  %v1767_v57 = vsub.f32 %v241_v38, %v1750_v46  ;;  %v547_v35 = vsub.f32 %v1735_v23, %v2047_v15  ;;  %v2049_v1 = vand.u32 4294901760, %v1755_v39 }
  0x4b   : > { %531 = vmatprep.subr.mxu1 %v530_v7  ;;  %v542_v50 = vand.u32 4294901760, %v541_v36  ;;  %v553_v55 = vsub.f32 %v1744_v62, %v2048_v3  ;;  %v2050_v40 = vand.u32 4294901760, %v1764_v63  ;;  %v1779_v56 = vsub.f32 %v1654_v53, %v1682_v43 }
  0x4c   : > { %537 = vmatpush1.msra.mxu1 %v536_v9  ;;  %v2053_v38 = vand.u32 4294901760, %v1767_v57  ;;  %v548_v34 = vand.u32 4294901760, %v547_v35  ;;  %v559_v15 = vsub.f32 %v1755_v39, %v2049_v1  ;;  %v1787_v7 = vsub.f32 %v1665_v58, %v1696_v30 }
  0x4d   : > { %543 = vmatprep.subr.mxu1 %v542_v50  ;;  %v554_v36 = vand.u32 4294901760, %v553_v55  ;;  %v565_v3 = vsub.f32 %v1764_v63, %v2050_v40  ;;  %v2056_v53 = vand.u32 4294901760, %v1779_v56  ;;  %v1795_v9 = vsub.f32 %v1688_v41, %v1716_v16 }
  0x4e   : > { %2089 = vst [vmem:[#allocation24_spill] sm:$0xff] %v1787_v7  ;;  %v386_v35 = vsub.f32 %v1767_v57, %v2053_v38  ;;  %549 = vmatpush1.msra.mxu1 %v548_v34  ;;  %v560_v1 = vand.u32 4294901760, %v559_v15  ;;  %v2055_v58 = vand.u32 4294901760, %v1787_v7 }
  0x4f   : > { %555 = vmatprep.subr.mxu1 %v554_v36  ;;  %v566_v55 = vand.u32 4294901760, %v565_v3  ;;  %v571_v50 = vsub.f32 %v1779_v56, %v2056_v53  ;;  %v2054_v40 = vand.u32 4294901760, %v1795_v9  ;;  %v2093_v36 = vld [vmem:[#allocation7_spill] sm:$0xff]  ;;  %v2103_v53 = vmov 0.0  }
  0x50   : > { %v387_v30 = vand.u32 4294901760, %v386_v35  ;;  %561 = vmatpush1.msra.mxu1 %v560_v1  ;;  %v577_v41 = vsub.f32 %v1787_v7, %v2055_v58  ;;  %v2091_v1 = vld [vmem:[#allocation19_spill] sm:$0xff]  ;;  %v2094_v35 = vld [vmem:[#allocation21_spill] sm:$0xff] }
  0x51   : > { %567 = vmatprep.subr.mxu1 %v566_v55  ;;  %v572_v38 = vand.u32 4294901760, %v571_v50  ;;  %v583_v15 = vsub.f32 %v1795_v9, %v2054_v40  ;;  %v2095_v55 = vld [vmem:[#allocation8_spill] sm:$0xff]  ;;  %v2096_v50 = vld [vmem:[#allocation9_spill] sm:$0xff]  ;;  %v2101_v40 = vld [vmem:[#allocation14_spill] sm:$0xff] }
  0x52   : > { %388 = vmatmul.mubr.f32.vlgmr.msra.gmra.mxu0 %v387_v30  ;;  %v578_v3 = vand.u32 4294901760, %v577_v41  ;;  %v2090_v30 = vld [vmem:[#allocation5_spill] sm:$0xff]  ;;  %v2097_v41 = vld [vmem:[#allocation10_spill] sm:$0xff]  ;;  %v2102_v58 = vld [vmem:[#allocation15_spill] sm:$0xff] }
  0x53   : > { %631 = vmatpush1.msra.mxu0 %v1418_v25  ;;  %573 = vmatpush1.msra.mxu1 %v572_v38  ;;  %v584_v34 = vand.u32 4294901760, %v583_v15  ;;  %v2092_v38 = vld [vmem:[#allocation6_spill] sm:$0xff]  ;;  %v2098_v15 = vld [vmem:[#allocation11_spill] sm:$0xff] }
  0x54   : > { %634 = vmatprep.subr.mxu0 %v1424_v27  ;;  %579 = vmatprep.subr.mxu1 %v578_v3  ;;  %v2099_v3 = vld [vmem:[#allocation12_spill] sm:$0xff] }
  0x55   : > { %637 = vmatpush1.msra.mxu0 %v1438_v33  ;;  %585 = vmatpush1.msra.mxu1 %v584_v34  ;;  %v2100_v34 = vld [vmem:[#allocation13_spill] sm:$0xff] }
  0x56   : > { %640 = vmatprep.subr.mxu0 %v1447_v37  ;;  %620 = vmatmul.mubr.f32.vlgmr.msra.gmra.mxu1 %v1750_v46  ;;  %v2104_v46 = vld [vmem:[#allocation16_spill] sm:$0xff] }
  0x57   : > { %643 = vmatpush1.msra.mxu0 %v1460_v42  ;;  %764 = vmatprep.subr.mxu1 %v1383_v4 }
  0x58   : > { %646 = vmatprep.subr.mxu0 %v1474_v47  ;;  %766 = vmatpush1.msra.mxu1 %v1385_v5 }
  0x59   : > { %649 = vmatpush1.msra.mxu0 %v1500_v61  ;;  %768 = vmatprep.subr.mxu1 %v1387_v6 }
  0x5a   : > { %652 = vmatprep.subr.mxu0 %v1512_v2  ;;  %770 = vmatpush1.msra.mxu1 %v1391_v11 }
  0x5b   : > { %655 = vmatpush1.msra.mxu0 %v1523_v14  ;;  %772 = vmatprep.subr.mxu1 %v1393_v12 }
  0x5c   : > { %658 = vmatprep.subr.mxu0 %v1534_v45  ;;  %774 = vmatpush1.msra.mxu1 %v1395_v13 }
  0x5d   : > { %661 = vmatpush1.msra.mxu0 %v1546_v54  ;;  %776 = vmatprep.subr.mxu1 %v1398_v17 }
  0x5e   : > { %664 = vmatprep.subr.mxu0 %v1560_v60  ;;  %778 = vmatpush1.msra.mxu1 %v1400_v18 }
  0x5f   : > { %667 = vmatpush1.msra.mxu0 %v1572_v44  ;;  %780 = vmatprep.subr.mxu1 %v1402_v19 }
  0x60   : > { %670 = vmatprep.subr.mxu0 %v1593_v59  ;;  %782 = vmatpush1.msra.mxu1 %v1415_v24 }
  0x61   : > { %673 = vmatpush1.msra.mxu0 %v1606_v8  ;;  %784 = vmatprep.subr.mxu1 %v1421_v26 }
  0x62   : > { %676 = vmatprep.subr.mxu0 %v1624_v51  ;;  %786 = vmatpush1.msra.mxu1 %v1435_v32 }
  0x63   : > { %679 = vmatpush1.msra.mxu0 %v1637_v0  ;;  %788 = vmatprep.subr.mxu1 %v2090_v30 }
  0x64   : > { %682 = vmatprep.subr.mxu0 %v2091_v1  ;;  %790 = vmatpush1.msra.mxu1 %v2092_v38 }
  0x65   : > { %685 = vmatpush1.msra.mxu0 %v1660_v29  ;;  %792 = vmatprep.subr.mxu1 %v2093_v36 }
  0x66   : > { %688 = vmatprep.subr.mxu0 %v2094_v35  ;;  %794 = vmatpush1.msra.mxu1 %v2095_v55 }
  0x67   : > { %691 = vmatpush1.msra.mxu0 %v1686_v52  ;;  %796 = vmatprep.subr.mxu1 %v2096_v50 }
  0x68   : > { %694 = vmatprep.subr.mxu0 %v1705_v10  ;;  %798 = vmatpush1.msra.mxu1 %v2097_v41 }
  0x69   : > { %697 = vmatpush1.msra.mxu0 %v1720_v22  ;;  %800 = vmatprep.subr.mxu1 %v2098_v15 }
  0x6a   : > { %700 = vmatprep.subr.mxu0 %v1729_v49  ;;  %802 = vmatpush1.msra.mxu1 %v2099_v3 }
  0x6b   : > { %703 = vmatpush1.msra.mxu0 %v1735_v23  ;;  %804 = vmatprep.subr.mxu1 %v2100_v34 }
  0x6c   : > { %706 = vmatprep.subr.mxu0 %v1744_v62  ;;  %806 = vmatpush1.msra.mxu1 %v2101_v40  ;;  %v2106_v40 = vand.u32 4294901760, %v1418_v25  ;;  %v2112_v25 = vld [vmem:[#allocation22_spill] sm:$0xff] }
  0x6d   : > { %709 = vmatpush1.msra.mxu0 %v1755_v39  ;;  %808 = vmatprep.subr.mxu1 %v2102_v58  ;;  %v2105_v58 = vand.u32 4294901760, %v1405_v20  ;;  %v2111_v20 = vand.u32 4294901760, %v1460_v42  ;;  %v2117_v42 = vand.u32 4294901760, %v1523_v14  ;;  %v2134_v14 = vand.u32 4294901760, %v1744_v62 }
  0x6e   : > { %712 = vmatprep.subr.mxu0 %v1764_v63  ;;  %754 = vmatprep.mubr.f32.mxu0 %v2103_v53 }
  0x6f   : > { %715 = vmatpush1.msra.mxu0 %v1779_v56  ;;  %810 = vmatpush1.msra.mxu1 %v2104_v46  ;;  %v2107_v46 = vand.u32 4294901760, %v1424_v27  ;;  %v2113_v27 = vand.u32 4294901760, %v1474_v47  ;;  %v2118_v47 = vand.u32 4294901760, %v1534_v45  ;;  %v2136_v45 = vand.u32 4294901760, %v1764_v63 }
  0x70   : > { %718 = vmatprep.subr.mxu0 %v1787_v7  ;;  %812 = vmatprep.subr.mxu1 %v1616_v21  ;;  %v2108_v7 = vld [vmem:[#allocation20_spill] sm:$0xff]  ;;  %v2109_v21 = vand.u32 4294901760, %v1438_v33  ;;  %v2114_v33 = vand.u32 4294901760, %v1500_v61  ;;  %v2119_v61 = vand.u32 4294901760, %v1546_v54  ;;  %v2137_v54 = vand.u32 4294901760, %v1779_v56 }
  0x71   : > { %721 = vmatpush1.msra.mxu0 %v1795_v9  ;;  %814 = vmatpush1.msra.mxu1 %v1627_v31  ;;  %v2110_v31 = vand.u32 4294901760, %v1447_v37  ;;  %v2115_v37 = vand.u32 4294901760, %v1767_v57 }
  0x72   : > { %757 = vmatmul.mubr.f32.vlgmr.msra.gmra.mxu0 %v1767_v57  ;;  %872 = vmatprep.subr.mxu0 %v2105_v58  ;;  %v2120_v57 = vand.u32 4294901760, %v1560_v60  ;;  %v2139_v60 = vld [vmem:[#allocation24_spill] sm:$0xff] }
  0x73   : > { %876 = vmatpush1.msra.mxu0 %v2106_v40  ;;  %816 = vmatprep.subr.mxu1 %v1640_v48  ;;  %v2142_v40 = vand.u32 4294901760, %v1795_v9 }
  0x74   : > { %880 = vmatprep.subr.mxu0 %v2107_v46  ;;  %818 = vmatpush1.msra.mxu1 %v2108_v7 }
  0x75   : > { %884 = vmatpush1.msra.mxu0 %v2109_v21  ;;  %820 = vmatprep.subr.mxu1 %v1663_v28  ;;  %v2141_v21 = vld [vmem:[#allocation15_spill] sm:$0xff] }
  0x76   : > { %888 = vmatprep.subr.mxu0 %v2110_v31  ;;  %822 = vmatpush1.msra.mxu1 %v1682_v43  ;;  %v2116_v31 = vand.u32 4294901760, %v1512_v2  ;;  %v2133_v2 = vand.u32 4294901760, %v1735_v23  ;;  %v274_v23 = vld [vmem:[%s1993_s3] sm:$0x3] }
  0x77   : > { %892 = vmatpush1.msra.mxu0 %v2111_v20  ;;  %824 = vmatprep.subr.mxu1 %v2112_v25 }
  0x78   : > { %896 = vmatprep.subr.mxu0 %v2113_v27  ;;  %826 = vmatpush1.msra.mxu1 %v1716_v16 }
  0x79   : > { %859 = vmatprep.mubr.f32.mxu1 %v2103_v53  ;;  %900 = vmatpush1.msra.mxu0 %v2114_v33 }
  0x7a   : > { %863 = vmatmul.mubr.f32.vlgmr.msra.gmra.mxu1 %v2115_v37  ;;  %904 = vmatprep.subr.mxu0 %v2116_v31 }
  0x7b   : > { %1038 = vmatprep.subr.mxu1 %v1383_v4  ;;  %908 = vmatpush1.msra.mxu0 %v2117_v42  ;;  %v2121_v4 = vand.u32 4294901760, %v1572_v44  ;;  %v2135_v44 = vand.u32 4294901760, %v1755_v39 }
  0x7c   : > { %1040 = vmatpush1.msra.mxu1 %v1385_v5  ;;  %912 = vmatprep.subr.mxu0 %v2118_v47  ;;  %v2122_v5 = vand.u32 4294901760, %v1593_v59  ;;  %v2138_v59 = vld [vmem:[#allocation14_spill] sm:$0xff] }
  0x7d   : > { %1042 = vmatprep.subr.mxu1 %v1387_v6  ;;  %916 = vmatpush1.msra.mxu0 %v2119_v61  ;;  %v2123_v6 = vand.u32 4294901760, %v1606_v8  ;;  %v2140_v8 = vand.u32 4294901760, %v2139_v60 }
  0x7e   : > { %1044 = vmatpush1.msra.mxu1 %v1391_v11  ;;  %920 = vmatprep.subr.mxu0 %v2120_v57  ;;  %v2124_v11 = vand.u32 4294901760, %v1624_v51  ;;  %v2144_v51 = vld [vmem:[#allocation23_spill] sm:$0xff] }
  0x7f   : > { %1046 = vmatprep.subr.mxu1 %v1393_v12  ;;  %924 = vmatpush1.msra.mxu0 %v2121_v4  ;;  %v2125_v12 = vand.u32 4294901760, %v1637_v0  ;;  %v2145_v0 = vld [vmem:[#allocation17_spill] sm:$0xff] }
  0x80   : > { %1048 = vmatpush1.msra.mxu1 %v1395_v13  ;;  %928 = vmatprep.subr.mxu0 %v2122_v5  ;;  %v2126_v13 = vand.u32 4294901760, %v2091_v1 }
  0x81   : > { %1050 = vmatprep.subr.mxu1 %v1398_v17  ;;  %932 = vmatpush1.msra.mxu0 %v2123_v6  ;;  %v2127_v17 = vand.u32 4294901760, %v1660_v29  ;;  %v2143_v29 = vld [vmem:[#allocation16_spill] sm:$0xff] }
  0x82   : > { %1052 = vmatpush1.msra.mxu1 %v1400_v18  ;;  %936 = vmatprep.subr.mxu0 %v2124_v11  ;;  %v2128_v18 = vand.u32 4294901760, %v2094_v35 }
  0x83   : > { %1054 = vmatprep.subr.mxu1 %v1402_v19  ;;  %940 = vmatpush1.msra.mxu0 %v2125_v12  ;;  %v2129_v19 = vand.u32 4294901760, %v1686_v52  ;;  %v2146_v52 = vld [vmem:[#allocation18_spill] sm:$0xff] }
  0x84   : > { %1056 = vmatpush1.msra.mxu1 %v1415_v24  ;;  %944 = vmatprep.subr.mxu0 %v2126_v13  ;;  %v2130_v24 = vand.u32 4294901760, %v1705_v10  ;;  %v276_v10 = vlaneseq }
  0x85   : > { %1058 = vmatprep.subr.mxu1 %v1421_v26  ;;  %948 = vmatpush1.msra.mxu0 %v2127_v17  ;;  %v2131_v26 = vand.u32 4294901760, %v1720_v22 }
  0x86   : > { %1060 = vmatpush1.msra.mxu1 %v1435_v32  ;;  %952 = vmatprep.subr.mxu0 %v2128_v18  ;;  %v2132_v32 = vand.u32 4294901760, %v1729_v49  ;;  %v277_v22 = vshrl.u32 %v276_v10, 7 }
  0x87   : > { %1062 = vmatprep.subr.mxu1 %v2090_v30  ;;  %956 = vmatpush1.msra.mxu0 %v2129_v19 }
  0x88   : > { %1064 = vmatpush1.msra.mxu1 %v2092_v38  ;;  %960 = vmatprep.subr.mxu0 %v2130_v24  ;;  %v278_v49 = vsub.s32 0, %v277_v22  ;;  %v282_v62 = vsub.s32 1, %v277_v22 }
  0x89   : > { %1066 = vmatprep.subr.mxu1 %v2093_v36  ;;  %964 = vmatpush1.msra.mxu0 %v2131_v26 }
  0x8a   : > { %1068 = vmatpush1.msra.mxu1 %v2095_v55  ;;  %968 = vmatprep.subr.mxu0 %v2132_v32  ;;  %v279_v46 = vrot.slane %v274_v23, %v278_v49  ;;  %v283_v63 = vrot.slane %v274_v23, %v282_v62 }
  0x8b   : > { %1070 = vmatprep.subr.mxu1 %v2096_v50  ;;  %972 = vmatpush1.msra.mxu0 %v2133_v2 }
  0x8c   : > { %1072 = vmatpush1.msra.mxu1 %v2097_v41  ;;  %976 = vmatprep.subr.mxu0 %v2134_v14 }
  0x8d   : > { %1074 = vmatprep.subr.mxu1 %v2098_v15  ;;  %980 = vmatpush1.msra.mxu0 %v2135_v44 }
  0x8e   : > { %1076 = vmatpush1.msra.mxu1 %v2099_v3  ;;  %984 = vmatprep.subr.mxu0 %v2136_v45 }
  0x8f   : > { %1078 = vmatprep.subr.mxu1 %v2100_v34  ;;  %988 = vmatpush1.msra.mxu0 %v2137_v54 }
  0x90   : > { %1080 = vmatpush1.msra.mxu1 %v2138_v59  ;;  %992 = vmatprep.subr.mxu0 %v2140_v8 }
  0x91   : > { %1082 = vmatprep.subr.mxu1 %v2141_v21  ;;  %996 = vmatpush1.msra.mxu0 %v2142_v40 }
  0x92   : > { %1029 = vmatprep.mubr.f32.mxu0 %v2103_v53  ;;  %1084 = vmatpush1.msra.mxu1 %v2143_v29 }
  0x93   : > { %1031 = vmatmul.mubr.f32.vlgmr.msra.gmra.mxu0 %v2144_v51  ;;  %1086 = vmatprep.subr.mxu1 %v2145_v0 }
  0x94   : > { %1088 = vmatpush1.msra.mxu1 %v2146_v52  ;;  %1133 = vmatprep.mubr.f32.mxu1 %v2103_v53 }
  0x95   : > { %1090 = vmatprep.subr.mxu1 %v1640_v48 }
  0x96   : > { %1092 = vmatpush1.msra.mxu1 %v2108_v7 }
  0x97   : > { %1094 = vmatprep.subr.mxu1 %v1663_v28 }
  0x98   : > { %1096 = vmatpush1.msra.mxu1 %v1682_v43 }
  0x99   : > { %1098 = vmatprep.subr.mxu1 %v2112_v25 }
  0x9a   : > { %1100 = vmatpush1.msra.mxu1 %v1716_v16 }
  0x9b   : > { %1135 = vmatmul.mubr.f32.vlgmr.msra.gmra.mxu1 %v2144_v51 }
 0x112   : > { %v389_v48 = vpop.f32.mrf.mxu0 }
 0x113   : > { %v390_v56 = vadd.f32 %v389_v48, %v279_v46 }
 0x114   : > { %v391_v39 = vpop.f32.mrf.mxu0 }
 0x115   : > { %v392_v53 = vadd.f32 %v391_v39, %v283_v63 }
 0x116   : > { %v621_v28 = vpop.f32.mrf.mxu1 }
 0x117   : > { %v622_v58 = vadd.f32 %v621_v28, %v390_v56 }
 0x118   : > { %v623_v7 = vpop.f32.mrf.mxu1 }
 0x119   : > { %v624_v1 = vadd.f32 %v623_v7, %v392_v53 }
 0x132   : > { %v758_v43 = vpop.f32.mrf.mxu0 }
 0x133   : > { %v759_v38 = vadd.f32 %v758_v43, %v622_v58 }
 0x134   : > { %v760_v16 = vpop.f32.mrf.mxu0 }
 0x135   : > { %v761_v35 = vadd.f32 %v760_v16, %v624_v1 }
 0x13a   : > { %v864_v9 = vpop.f32.mrf.mxu1 }
 0x13b   : > { %v865_v55 = vadd.f32 %v864_v9, %v759_v38 }
 0x13c   : > { %v866_v36 = vpop.f32.mrf.mxu1 }
 0x13d   : > { %v867_v41 = vadd.f32 %v866_v36, %v761_v35 }
 0x153   : > { %v1032_v30 = vpop.f32.mrf.mxu0 }
 0x154   : > { %v1033_v15 = vadd.f32 %v1032_v30, %v865_v55 }
 0x155   : > { %v1034_v50 = vpop.f32.mrf.mxu0 }
 0x156   : > { %v1035_v34 = vadd.f32 %v1034_v50, %v867_v41 }
 0x15b   : > { %v1136_v3 = vpop.f32.mrf.mxu1 }
 0x15c   : > { %v1137_v20 = vadd.f32 %v1136_v3, %v1033_v15 }
 0x15d   : > { %v1138_v25 = vpop.f32.mrf.mxu1 }
 0x15e   : > { %v1139_v27 = vadd.f32 %v1138_v25, %v1035_v34  ;;  %1142 = vmax.xlane.f32.xlu0 %v1137_v20 }
 0x160   : > { %1141 = vst [vmem:[%s1995_s5] sm:$0xff] %v1139_v27 }
 0x1e7   : > { %v1143_v33 = vpop.xlane.xlu0 %1142 }
 0x1e8   : > { %v1144_v37 = vsub.f32 %v1137_v20, %v1143_v33 }
 0x1ea   : > { %v1145_v31 = vmul.f32 1.442695, %v1144_v37 }
 0x1ec   : > { %1258 = vpow2.f32 %v1145_v31 }
 0x1f9   : > { %v1259_v42 = vpop.eup %1258 }
 0x1fa   : > { %1147 = vadd.xlane.f32.xlu0 %v1259_v42 }
 0x283   : > { %v1148_v47 = vpop.xlane.xlu0 %1147 }
 0x284   : > { %1260 = vlog2.f32 %v1148_v47 }
 0x291   : > { %v1261_v61 = vpop.eup %1260 }
 0x292   : > { %v1150_v57 = vmul.f32 0.6931472, %v1261_v61 }
 0x294   : > { %v1151_v4 = vsub.f32 %v1144_v37, %v1150_v57 }
 0x296   : > { %1152 = vst [vmem:[%s1373_s10] sm:$0xff] %v1151_v4 }
 0x297 PF: > { %s17_s18 = sadd.s32 1, %s1298_s18  }
 0x298   : > { %p14_p2 = scmp.ge.s32.totalorder %s17_s18, 10  }
 0x29a   :  { %16 = sbr.rel (!%p14_p2) target bundleno = 1 (0x1), region = 83 }
 0x29f   :  { %1178 = vsyncpa [#allocation3], 1 }
 0x2a0   :  { %1180 = vsyncpa [#allocation3 + $0x1], 1 }

</bundles_post_ra>
